<compile_context>
chip_gen: v5e
topology: v5e:2x2
jax: 0.10.0
libtpu: 0.0.40
codegen_flags: <defaults>
</compile_context>

<pallas_src>
import functools

import jax
import jax.numpy as jnp
from jax.experimental import pallas as pl
from jax.experimental.pallas import tpu as pltpu

D_POS = 3  # 3-D point coordinates


def _round_up(x, m):
    return ((x + m - 1) // m) * m


def _vmem_config():
    """Per-generation VMEM sizing: ~3/4 of physical VMEM, capped at 100 MiB.

    v7x (64 MiB physical)   -> 48 MiB limit, 2048-lane node chunks.
    v5e/v6e (128 MiB)       -> ~96-100 MiB limit, 4096-lane node chunks.
    """
    cap = 64 * 1024 * 1024
    try:
        cap = int(getattr(pltpu.get_tpu_info(), "vmem_capacity_bytes", cap))
    except Exception:  # conservative fallback (fits every generation)
        pass
    limit = min(cap * 3 // 4, 100 * 1024 * 1024)
    max_chunk = 2048 if limit <= 64 * 1024 * 1024 else 4096
    return limit, max_chunk


def _pick_s_tile(s_base, max_tile, min_tiles):
    """Largest multiple-of-8 divisor of s_base that is <= max_tile and yields
    >= min_tiles tiles (avoids a near-full wasted centroid tile; >= 2 tiles
    keeps both v7x TensorCores busy when B == 1). Falls back to 8."""
    best = 8
    for t in range(8, min(max_tile, s_base) + 1, 8):
        if s_base % t == 0 and s_base // t >= min_tiles:
            best = t
    return best


def _ball_query_kernel(centers_ref, posT_ref, out_ref, *,
                       radius_sq, sentinel, n_neighbor):
    """One (batch, centroid-tile, node-chunk) step of the ball query.

    centers_ref: (1, S_t, 3)       gathered centroid positions
    posT_ref:    (1, 3, n_chunk)   node-position chunk, channel-major (lanes)
    out_ref:     (1, S_t, out_w)   running selection, resident across chunks
    """
    n_idx = pl.program_id(2)
    c = centers_ref[0].astype(jnp.float32)       # [S_t, 3]
    pT = posT_ref[0].astype(jnp.float32)         # [3, n_chunk]
    s_t = c.shape[0]
    n_chunk = pT.shape[1]
    out_w = out_ref.shape[-1]

    # Exact squared distance on the VPU, initialized from channel 0 (no zeros
    # pass).  Kept exact (not the MXU |c|^2+|p|^2-2c.p expansion) so the
    # radius threshold is bit-identical to the (c-p)^2 reference.
    diff = c[:, 0:1] - pT[0:1, :]                # [S_t, n_chunk]
    dist = diff * diff
    for d in range(1, D_POS):
        diff = c[:, d:d + 1] - pT[d:d + 1, :]
        dist = dist + diff * diff

    # Global node indices for this chunk; out-of-radius -> sentinel (= N).
    # Padded node columns carry huge coordinates, so they fail the radius
    # test automatically -- no extra padded-node masking pass.
    base = n_idx * n_chunk
    idx = base + jax.lax.broadcasted_iota(jnp.int32, (s_t, n_chunk), 1)
    cand = jnp.where(dist <= radius_sq, idx, sentinel)

    # Running selection lives in the resident output block.
    @pl.when(n_idx == 0)
    def _():
        out_ref[0] = jnp.full((s_t, out_w), sentinel, jnp.int32)

    prev = out_ref[0]                                   # [S_t, out_w]
    full = jnp.concatenate([prev, cand], axis=-1)       # [S_t, out_w+n_chunk]

    # K smallest indices of prev U chunk == torch's sort(...)[:, :, :K]:
    # valid indices are unique and earlier-chunk indices are all smaller than
    # this chunk's, so the iterative min-extraction merge is exact.  (Integer
    # equality in the invalidation -- never replace with a float compare.)
    cols = []
    for k in range(n_neighbor):
        m = jnp.min(full, axis=-1, keepdims=True)       # [S_t, 1] lane reduce
        cols.append(m)
        if k + 1 < n_neighbor:                          # last invalidation is dead
            full = jnp.where(full == m, sentinel, full)
    sel = jnp.concatenate(cols, axis=-1)                # [S_t, K]

    # On the final chunk replace empty slots with the first neighbor
    # (torch's "group_first" fix-up).
    is_last = n_idx == pl.num_programs(2) - 1
    sel = jnp.where(jnp.logical_and(is_last, sel == sentinel), cols[0], sel)

    if out_w > n_neighbor:
        pad = jnp.full((s_t, out_w - n_neighbor), sentinel, jnp.int32)
        sel = jnp.concatenate([sel, pad], axis=-1)
    out_ref[0] = sel                                    # single lane-dense store


def fixed_radius_ball_query(pos, centroids, radius, n_neighbor, *,
                            max_s_tile=512, max_n_chunk=None):
    """group_idx = FixedRadiusNearNeighbors(radius, n_neighbor)(pos, centroids).

    pos:       [B, N, 3] float32
    centroids: [B, S]    int32
    returns:   [B, S, n_neighbor] int32
    """
    B, N, _ = pos.shape
    S = centroids.shape[1]
    K = n_neighbor

    vmem_limit, auto_chunk = _vmem_config()
    if max_n_chunk is None:
        max_n_chunk = auto_chunk

    # Node-axis chunking (lanes): full width if it fits, else fixed chunks.
    n_pad = _round_up(N, 128)
    if n_pad <= max_n_chunk:
        n_chunk = n_pad
    else:
        n_chunk = max_n_chunk
        n_pad = _round_up(N, n_chunk)
    n_chunks = n_pad // n_chunk

    # Centroid tiling (sublanes): divisor of round_up(S, 8), >= 2 tiles if B==1.
    s_base = _round_up(S, 8)
    min_tiles = 2 if B == 1 else 1
    s_tile = _pick_s_tile(s_base, max_s_tile, min_tiles)
    s_pad = s_base
    n_s_tiles = s_pad // s_tile

    out_w = _round_up(max(K, 1), 128)           # lane-dense output block

    # Only the tiny node/centroid tables are padded (no [E, C] intermediates).
    posT = jnp.swapaxes(pos, 1, 2).astype(jnp.float32)     # [B, 3, N]
    if n_pad != N:
        # Huge coordinate -> padded columns always fail the radius test.
        posT = jnp.pad(posT, ((0, 0), (0, 0), (0, n_pad - N)),
                       constant_values=1e6)
    cent = centroids.astype(jnp.int32)
    if s_pad != S:
        cent = jnp.pad(cent, ((0, 0), (0, s_pad - S)))

    # Centroid-position gather: B*S*3 floats -> negligible HBM traffic.
    centers = jnp.take_along_axis(pos.astype(jnp.float32),
                                  cent[..., None], axis=1)  # [B, s_pad, 3]

    kernel = functools.partial(
        _ball_query_kernel,
        radius_sq=float(radius) ** 2,
        sentinel=N,
        n_neighbor=K,
    )

    out = pl.pallas_call(
        kernel,
        out_shape=jax.ShapeDtypeStruct((B, s_pad, out_w), jnp.int32),
        grid_spec=pltpu.PrefetchScalarGridSpec(
            num_scalar_prefetch=0,
            grid=(B, n_s_tiles, n_chunks),
            in_specs=[
                pl.BlockSpec((1, s_tile, D_POS), lambda b, s, n: (b, s, 0)),
                pl.BlockSpec((1, D_POS, n_chunk), lambda b, s, n: (b, 0, n)),
            ],
            out_specs=pl.BlockSpec((1, s_tile, out_w),
                                   lambda b, s, n: (b, s, 0)),
        ),
        compiler_params=pltpu.CompilerParams(
            dimension_semantics=("parallel", "parallel", "arbitrary"),
            vmem_limit_bytes=vmem_limit,
        ),
    )(centers, posT)

    return out[:, :S, :K]


def fixed_radius_nn_graph(pos, centroids, radius, n_neighbor, feat=None):
    """JAX/Pallas equivalent of FixedRadiusNNGraph.forward.

    Returns fixed-shape arrays describing the batched NN graph:
      group_idx: [B, S, K]  ball-query neighbor indices (Pallas kernel)
      src, dst : [B, S*K]   per-batch edge endpoints (global node ids)
      center   : [B, N]     1.0 at centroid nodes, else 0.0
      pos, feat:            node data passed through
    """
    # TODO(synk): torch.unique relabeling and dgl.graph / dgl.batch produce
    # data-dependent shapes / graph objects; edges are kept as global node ids.
    B, N, _ = pos.shape
    S = centroids.shape[1]
    K = n_neighbor

    group_idx = fixed_radius_ball_query(pos, centroids, radius, n_neighbor)

    src = group_idx.reshape(B, S * K)
    dst = jnp.repeat(centroids.astype(jnp.int32), K, axis=-1)       # [B, S*K]
    center = jnp.zeros((B, N), pos.dtype)
    center = center.at[jnp.arange(B)[:, None], centroids].set(1.0)

    graph = {"group_idx": group_idx, "src": src, "dst": dst,
             "center": center, "pos": pos}
    if feat is not None:
        graph["feat"] = feat
    return graph


if __name__ == "__main__":
    key = jax.random.PRNGKey(0)
    k_pos, k_feat, k_cent, k_pos2, k_cent2 = jax.random.split(key, 5)

    # Pure-JAX reference of FixedRadiusNearNeighbors.forward.
    def ball_query_ref(pos, centroids, radius, K):
        B, N, _ = pos.shape
        center = jnp.take_along_axis(pos, centroids[..., None], axis=1)
        diff = center[:, :, None, :] - pos[:, None, :, :]        # [B,S,N,3]
        d = jnp.sum(diff * diff, axis=-1)
        idx = jnp.broadcast_to(jnp.arange(N, dtype=jnp.int32), d.shape)
        gi = jnp.where(d > radius ** 2, N, idx)
        gi = jnp.sort(gi, axis=-1)[..., :K]
        first = gi[..., :1]
        return jnp.where(gi == N, jnp.broadcast_to(first, gi.shape), gi)

    radius = 0.9

    # --- primary test: full graph construction at small shapes ---
    B, N, S, K, F = 2, 64, 16, 8, 13
    pos = jax.random.normal(k_pos, (B, N, D_POS), dtype=jnp.float32)
    feat = jax.random.normal(k_feat, (B, N, F), dtype=jnp.float32)
    # Distinct centroid indices per batch (stand-in for farthest-point sampling).
    centroids = jnp.stack(
        [jax.random.permutation(jax.random.fold_in(k_cent, b), N)[:S]
         for b in range(B)]
    ).astype(jnp.int32)

    graph = fixed_radius_nn_graph(pos, centroids, radius, K, feat)
    graph = jax.block_until_ready(graph)
    group_idx = graph["group_idx"]

    ref = ball_query_ref(pos, centroids, radius, K)
    assert group_idx.shape == (B, S, K), group_idx.shape
    assert jnp.array_equal(group_idx, ref), "ball-query mismatch vs reference"
    assert jnp.array_equal(graph["src"], ref.reshape(B, S * K))
    assert jnp.array_equal(graph["dst"], jnp.repeat(centroids, K, axis=-1))
    assert jnp.array_equal(
        graph["center"],
        jnp.zeros((B, N), pos.dtype).at[jnp.arange(B)[:, None], centroids].set(1.0),
    )
    assert graph["feat"].shape == (B, N, F)

    # --- second test: force the multi-chunk / multi-tile merge path ---
    B2, N2, S2 = 2, 384, 24
    pos2 = jax.random.normal(k_pos2, (B2, N2, D_POS), dtype=jnp.float32)
    centroids2 = jnp.stack(
        [jax.random.permutation(jax.random.fold_in(k_cent2, b), N2)[:S2]
         for b in range(B2)]
    ).astype(jnp.int32)
    out2 = fixed_radius_ball_query(pos2, centroids2, radius, K,
                                   max_s_tile=8, max_n_chunk=128)
    out2 = jax.block_until_ready(out2)
    ref2 = ball_query_ref(pos2, centroids2, radius, K)
    assert jnp.array_equal(out2, ref2), "chunked ball-query mismatch vs reference"

    print("KERNEL_OK")
</pallas_src>

<mosaic_0001>
module attributes {stable_mosaic.version = 11 : i64} {
  func.func @_ball_query_kernel(%arg0: i32, %arg1: i32, %arg2: i32, %arg3: memref<1x16x3xf32, #tpu.memory_space<vmem>>, %arg4: memref<1x3x128xf32, #tpu.memory_space<vmem>>, %arg5: memref<1x16x128xi32, #tpu.memory_space<vmem>>) attributes {dimension_semantics = [#tpu.dimension_semantics<parallel>, #tpu.dimension_semantics<parallel>, #tpu.dimension_semantics<arbitrary>], iteration_bounds = array<i64: 2, 1, 1>, scalar_prefetch = 0 : i64, scratch_operands = 0 : i64, tpu.core_type = #tpu.core_type<tc>, window_params = [{transform_indices = @transform_0, window_bounds = array<i64: 1, 16, 3>}, {transform_indices = @transform_1, window_bounds = array<i64: 1, 3, 128>}, {transform_indices = @transform_2, window_bounds = array<i64: 1, 16, 128>}]} {
    %c0 = arith.constant 0 : index
    %c0_0 = arith.constant 0 : index
    %c0_1 = arith.constant 0 : index
    %0 = vector.load %arg3[%c0, %c0_0, %c0_1] : memref<1x16x3xf32, #tpu.memory_space<vmem>>, vector<1x16x3xf32>
    %1 = vector.shape_cast %0 : vector<1x16x3xf32> to vector<16x3xf32>
    %c0_2 = arith.constant 0 : index
    %c0_3 = arith.constant 0 : index
    %c0_4 = arith.constant 0 : index
    %2 = vector.load %arg4[%c0_2, %c0_3, %c0_4] : memref<1x3x128xf32, #tpu.memory_space<vmem>>, vector<1x3x128xf32>
    %3 = vector.shape_cast %2 : vector<1x3x128xf32> to vector<3x128xf32>
    %4 = vector.extract_strided_slice %1 {offsets = [0, 0], sizes = [16, 1], strides = [1, 1]} : vector<16x3xf32> to vector<16x1xf32>
    %5 = vector.extract_strided_slice %3 {offsets = [0, 0], sizes = [1, 128], strides = [1, 1]} : vector<3x128xf32> to vector<1x128xf32>
    %6 = vector.broadcast %4 : vector<16x1xf32> to vector<16x128xf32>
    %7 = vector.broadcast %5 : vector<1x128xf32> to vector<16x128xf32>
    %8 = arith.subf %6, %7 : vector<16x128xf32>
    %9 = arith.mulf %8, %8 : vector<16x128xf32>
    %10 = vector.extract_strided_slice %1 {offsets = [0, 1], sizes = [16, 1], strides = [1, 1]} : vector<16x3xf32> to vector<16x1xf32>
    %11 = vector.extract_strided_slice %3 {offsets = [1, 0], sizes = [1, 128], strides = [1, 1]} : vector<3x128xf32> to vector<1x128xf32>
    %12 = vector.broadcast %10 : vector<16x1xf32> to vector<16x128xf32>
    %13 = vector.broadcast %11 : vector<1x128xf32> to vector<16x128xf32>
    %14 = arith.subf %12, %13 : vector<16x128xf32>
    %15 = arith.mulf %14, %14 : vector<16x128xf32>
    %16 = arith.addf %9, %15 : vector<16x128xf32>
    %17 = vector.extract_strided_slice %1 {offsets = [0, 2], sizes = [16, 1], strides = [1, 1]} : vector<16x3xf32> to vector<16x1xf32>
    %18 = vector.extract_strided_slice %3 {offsets = [2, 0], sizes = [1, 128], strides = [1, 1]} : vector<3x128xf32> to vector<1x128xf32>
    %19 = vector.broadcast %17 : vector<16x1xf32> to vector<16x128xf32>
    %20 = vector.broadcast %18 : vector<1x128xf32> to vector<16x128xf32>
    %21 = arith.subf %19, %20 : vector<16x128xf32>
    %22 = arith.mulf %21, %21 : vector<16x128xf32>
    %23 = arith.addf %16, %22 : vector<16x128xf32>
    %c128_i32 = arith.constant 128 : i32
    %24 = arith.muli %arg2, %c128_i32 : i32
    %25 = tpu.iota {dimensions = array<i32: 1>} : vector<16x128xi32>
    %26 = vector.broadcast %24 : i32 to vector<16x128xi32>
    %27 = arith.addi %26, %25 : vector<16x128xi32>
    %cst = arith.constant 8.100000e-01 : f32
    %28 = vector.broadcast %cst : f32 to vector<16x128xf32>
    %29 = arith.cmpf ole, %23, %28 : vector<16x128xf32>
    %c64_i32 = arith.constant 64 : i32
    %30 = vector.broadcast %c64_i32 : i32 to vector<16x128xi32>
    %31 = arith.select %29, %27, %30 : vector<16x128xi1>, vector<16x128xi32>
    %c0_i32 = arith.constant 0 : i32
    %32 = arith.cmpi eq, %arg2, %c0_i32 : i32
    %33 = arith.extui %32 : i1 to i32
    %c0_i32_5 = arith.constant 0 : i32
    %34 = arith.cmpi ne, %33, %c0_i32_5 : i32
    scf.if %34 {
      %c64_i32_30 = arith.constant 64 : i32
      %96 = vector.broadcast %c64_i32_30 : i32 to vector<16x128xi32>
      %c0_31 = arith.constant 0 : index
      %c0_32 = arith.constant 0 : index
      %c0_33 = arith.constant 0 : index
      %97 = vector.load %arg5[%c0_31, %c0_32, %c0_33] : memref<1x16x128xi32, #tpu.memory_space<vmem>>, vector<1x16x128xi32>
      %98 = vector.shape_cast %97 : vector<1x16x128xi32> to vector<16x128xi32>
      %99 = vector.shape_cast %96 : vector<16x128xi32> to vector<1x16x128xi32>
      tpu.vector_store %arg5[%c0_31, %c0_32, %c0_33], %99 {strides = array<i32>} : memref<1x16x128xi32, #tpu.memory_space<vmem>>, vector<1x16x128xi32>,
    } else {
    }
    %c0_6 = arith.constant 0 : index
    %c0_7 = arith.constant 0 : index
    %c0_8 = arith.constant 0 : index
    %35 = vector.load %arg5[%c0_6, %c0_7, %c0_8] : memref<1x16x128xi32, #tpu.memory_space<vmem>>, vector<1x16x128xi32>
    %36 = vector.shape_cast %35 : vector<1x16x128xi32> to vector<16x128xi32>
    %37 = tpu.concatenate %36, %31 in 1 : vector<16x128xi32>, vector<16x128xi32> -> vector<16x256xi32>
    %cst_9 = arith.constant dense<2147483647> : vector<16xi32>
    %38 = vector.multi_reduction <minsi>, %37, %cst_9 [1] : vector<16x256xi32> to vector<16xi32>
    %39 = vector.shape_cast %38 : vector<16xi32> to vector<16x1xi32>
    %40 = vector.broadcast %39 : vector<16x1xi32> to vector<16x256xi32>
    %41 = arith.cmpi eq, %37, %40 : vector<16x256xi32>
    %c64_i32_10 = arith.constant 64 : i32
    %42 = vector.broadcast %c64_i32_10 : i32 to vector<16x256xi32>
    %43 = arith.select %41, %42, %37 : vector<16x256xi1>, vector<16x256xi32>
    %cst_11 = arith.constant dense<2147483647> : vector<16xi32>
    %44 = vector.multi_reduction <minsi>, %43, %cst_11 [1] : vector<16x256xi32> to vector<16xi32>
    %45 = vector.shape_cast %44 : vector<16xi32> to vector<16x1xi32>
    %46 = vector.broadcast %45 : vector<16x1xi32> to vector<16x256xi32>
    %47 = arith.cmpi eq, %43, %46 : vector<16x256xi32>
    %c64_i32_12 = arith.constant 64 : i32
    %48 = vector.broadcast %c64_i32_12 : i32 to vector<16x256xi32>
    %49 = arith.select %47, %48, %43 : vector<16x256xi1>, vector<16x256xi32>
    %cst_13 = arith.constant dense<2147483647> : vector<16xi32>
    %50 = vector.multi_reduction <minsi>, %49, %cst_13 [1] : vector<16x256xi32> to vector<16xi32>
    %51 = vector.shape_cast %50 : vector<16xi32> to vector<16x1xi32>
    %52 = vector.broadcast %51 : vector<16x1xi32> to vector<16x256xi32>
    %53 = arith.cmpi eq, %49, %52 : vector<16x256xi32>
    %c64_i32_14 = arith.constant 64 : i32
    %54 = vector.broadcast %c64_i32_14 : i32 to vector<16x256xi32>
    %55 = arith.select %53, %54, %49 : vector<16x256xi1>, vector<16x256xi32>
    %cst_15 = arith.constant dense<2147483647> : vector<16xi32>
    %56 = vector.multi_reduction <minsi>, %55, %cst_15 [1] : vector<16x256xi32> to vector<16xi32>
    %57 = vector.shape_cast %56 : vector<16xi32> to vector<16x1xi32>
    %58 = vector.broadcast %57 : vector<16x1xi32> to vector<16x256xi32>
    %59 = arith.cmpi eq, %55, %58 : vector<16x256xi32>
    %c64_i32_16 = arith.constant 64 : i32
    %60 = vector.broadcast %c64_i32_16 : i32 to vector<16x256xi32>
    %61 = arith.select %59, %60, %55 : vector<16x256xi1>, vector<16x256xi32>
    %cst_17 = arith.constant dense<2147483647> : vector<16xi32>
    %62 = vector.multi_reduction <minsi>, %61, %cst_17 [1] : vector<16x256xi32> to vector<16xi32>
    %63 = vector.shape_cast %62 : vector<16xi32> to vector<16x1xi32>
    %64 = vector.broadcast %63 : vector<16x1xi32> to vector<16x256xi32>
    %65 = arith.cmpi eq, %61, %64 : vector<16x256xi32>
    %c64_i32_18 = arith.constant 64 : i32
    %66 = vector.broadcast %c64_i32_18 : i32 to vector<16x256xi32>
    %67 = arith.select %65, %66, %61 : vector<16x256xi1>, vector<16x256xi32>
    %cst_19 = arith.constant dense<2147483647> : vector<16xi32>
    %68 = vector.multi_reduction <minsi>, %67, %cst_19 [1] : vector<16x256xi32> to vector<16xi32>
    %69 = vector.shape_cast %68 : vector<16xi32> to vector<16x1xi32>
    %70 = vector.broadcast %69 : vector<16x1xi32> to vector<16x256xi32>
    %71 = arith.cmpi eq, %67, %70 : vector<16x256xi32>
    %c64_i32_20 = arith.constant 64 : i32
    %72 = vector.broadcast %c64_i32_20 : i32 to vector<16x256xi32>
    %73 = arith.select %71, %72, %67 : vector<16x256xi1>, vector<16x256xi32>
    %cst_21 = arith.constant dense<2147483647> : vector<16xi32>
    %74 = vector.multi_reduction <minsi>, %73, %cst_21 [1] : vector<16x256xi32> to vector<16xi32>
    %75 = vector.shape_cast %74 : vector<16xi32> to vector<16x1xi32>
    %76 = vector.broadcast %75 : vector<16x1xi32> to vector<16x256xi32>
    %77 = arith.cmpi eq, %73, %76 : vector<16x256xi32>
    %c64_i32_22 = arith.constant 64 : i32
    %78 = vector.broadcast %c64_i32_22 : i32 to vector<16x256xi32>
    %79 = arith.select %77, %78, %73 : vector<16x256xi1>, vector<16x256xi32>
    %cst_23 = arith.constant dense<2147483647> : vector<16xi32>
    %80 = vector.multi_reduction <minsi>, %79, %cst_23 [1] : vector<16x256xi32> to vector<16xi32>
    %81 = vector.shape_cast %80 : vector<16xi32> to vector<16x1xi32>
    %82 = tpu.concatenate %39, %45, %51, %57, %63, %69, %75, %81 in 1 : vector<16x1xi32>, vector<16x1xi32>, vector<16x1xi32>, vector<16x1xi32>, vector<16x1xi32>, vector<16x1xi32>, vector<16x1xi32>, vector<16x1xi32> -> vector<16x8xi32>
    %c0_i32_24 = arith.constant 0 : i32
    %83 = arith.cmpi eq, %arg2, %c0_i32_24 : i32
    %c64_i32_25 = arith.constant 64 : i32
    %84 = vector.broadcast %c64_i32_25 : i32 to vector<16x8xi32>
    %85 = arith.cmpi eq, %82, %84 : vector<16x8xi32>
    %86 = vector.broadcast %83 : i1 to vector<16x8xi1>
    %87 = arith.andi %86, %85 : vector<16x8xi1>
    %88 = vector.shape_cast %39 : vector<16x1xi32> to vector<16x1xi32>
    %89 = vector.broadcast %88 : vector<16x1xi32> to vector<16x8xi32>
    %90 = arith.select %87, %89, %82 : vector<16x8xi1>, vector<16x8xi32>
    %c64_i32_26 = arith.constant 64 : i32
    %91 = vector.broadcast %c64_i32_26 : i32 to vector<16x120xi32>
    %92 = tpu.concatenate %90, %91 in 1 : vector<16x8xi32>, vector<16x120xi32> -> vector<16x128xi32>
    %c0_27 = arith.constant 0 : index
    %c0_28 = arith.constant 0 : index
    %c0_29 = arith.constant 0 : index
    %93 = vector.load %arg5[%c0_27, %c0_28, %c0_29] : memref<1x16x128xi32, #tpu.memory_space<vmem>>, vector<1x16x128xi32>
    %94 = vector.shape_cast %93 : vector<1x16x128xi32> to vector<16x128xi32>
    %95 = vector.shape_cast %92 : vector<16x128xi32> to vector<1x16x128xi32>
    tpu.vector_store %arg5[%c0_27, %c0_28, %c0_29], %95 {strides = array<i32>} : memref<1x16x128xi32, #tpu.memory_space<vmem>>, vector<1x16x128xi32>,
    return
  }
  func.func @transform_0(%arg0: i32, %arg1: i32, %arg2: i32) -> (i32, i32, i32) {
    %c0_i32 = arith.constant 0 : i32
    %c0_i32_0 = arith.constant 0 : i32
    return %arg0, %arg1, %c0_i32 : i32, i32, i32
  }
  func.func @transform_1(%arg0: i32, %arg1: i32, %arg2: i32) -> (i32, i32, i32) {
    %c0_i32 = arith.constant 0 : i32
    %c0_i32_0 = arith.constant 0 : i32
    return %arg0, %c0_i32, %arg2 : i32, i32, i32
  }
  func.func @transform_2(%arg0: i32, %arg1: i32, %arg2: i32) -> (i32, i32, i32) {
    %c0_i32 = arith.constant 0 : i32
    %c0_i32_0 = arith.constant 0 : i32
    return %arg0, %arg1, %c0_i32 : i32, i32, i32
  }
}

</mosaic_0001>

<bundles_post_ra>
// kernel: tpu_custom_call.1
= control target key start
LH: loop header
LB: loop body
LE: loop exit
PB: predicated region body
PF: predicated region fallthrough
CT: control target
= control target key end

     0   :  { %7 = vsyncpa [#allocation3], 0  ;;  %s1068_s0 = inlined_call_operand.vmem [shape: f32[2,16,3], index: 0, kind: input, shape index: {}]   ;;  %s1069_s1 = inlined_call_operand.vmem [shape: f32[2,3,128], index: 1, kind: input, shape index: {}]   ;;  %s1070_s2 = inlined_call_operand.hbm [shape: s32[2,16,128], index: 2, kind: output, shape index: {}]  }
   0x1   :  { %9 = vsyncpa [#allocation3 + $0x1], 0  ;;  %s946_s9 = smov 0   ;;  %s948_s10 = smov 0  }
   0x2   :  { %s950_s11 = smov 0   ;;  %s952_s12 = smov 0  }
   0x3   :  { %s954_s13 = smov 0   ;;  %s956_s14 = smov 0  }
   0x4 LB: > { %s735_s15 = sadd.s32 4294967295, %s924_s14   ;;  %s736_s16 = sadd.s32 4294967294, %s924_s14   ;;  %s924_s14 = sphi %s956_s14, %s15_s14   ;;  %s920_s13 = sphi %s954_s13, %s1077_s13   ;;  %s916_s12 = sphi %s952_s12, %s1076_s12   ;;  %s912_s11 = sphi %s950_s11, %s1075_s11   ;;  %s908_s10 = sphi %s948_s10, %s1074_s10   ;;  %s904_s9 = sphi %s946_s9, %s1073_s9  }
   0x5   : > { %s34_s17 = sadd.s32 1, %s920_s13  ;;  %s99_s18 = sadd.s32 1, %s912_s11 }
   0x6   : > { %p36_p0 = scmp.ge.s32.totalorder %s34_s17, 2  ;;  %p109_p1 = scmp.ne.s32.totalorder %s912_s11, %s908_s10 }
   0x7   : > { %p110_p2 = scmp.eq.s32.totalorder %s735_s15, 1  ;;  %p115_p3 = scmp.ne.s32.totalorder %s908_s10, %s904_s9 }
   0x8   : > { %s1079_s17 = smov (%p36_p0, %s34_s17), 0  ;;  %p116_p5 = scmp.eq.s32.totalorder %s736_s16, 1 }
   0x9   : > { %p986_p4 = por %p110_p2, %p109_p1  ;;  %s94_s20 = ssub.s32 %s920_s13, %s1079_s17 }
   0xa   : > { %p739_p6 = scmp.ge.s32.totalorder %s924_s14, 1  ;;  %p97_p7 = scmp.eq.s32.totalorder %s94_s20, 0 }
   0xb   : > { %p993_p8 = por %p116_p5, %p115_p3  ;;  %p157_p9 = scmp.lt.s32.totalorder %s924_s14, 3 }
   0xc   : > { %s999_s22 = scalar_select %p97_p7, %s912_s11, %s99_s18  }
   0xd   : > { %p158_p10 = pnand %p739_p6, %p157_p9 }
   0xe   : > { %p191_p11 = scmp.lt.s32.totalorder (!%p158_p10), %s916_s12, 1  ;;  %s187_s4 = sand.u32 (!%p158_p10), 1, %s908_s10  }
   0xf   : > { %161 = sbr.rel (%p158_p10) target bundleno = 2132 (0x854), region = 28  ;;  %s740_s5 = sshll.u32 (!%p158_p10), %s187_s4, 4 }
  0x10   : > { %s750_s6 = sshll.u32 (!%p158_p10), %s916_s12, 4  ;;  %s189_s16 = scalar_lea.vmem (!%p158_p10), [#allocation2], %s740_s5 }
  0x11   : > { %s634_s15 = scalar_lea.hbm (!%p158_p10), %s1070_s2, %s750_s6  ;;  %s635_s18 = sshll.u32 (!%p158_p10), %s189_s16, 4  ;;  %s636_s18 = int_to_ptr.vmem [resolvable:$true] %s635_s18 }
  0x12   : > { %s637_s20 = sshll.u32 (!%p158_p10), %s634_s15, 4  ;;  %s638_s20 = int_to_ptr.hbm [resolvable:$true] %s637_s20 }
  0x14   : > { %v926_v0 = vmov 1   ;;  %v927_v1 = vmov 0   ;;  %s192_s23 = scalar_select %p191_p11, %s916_s12, 1  ;;  %v928_v2 = vmov 2   ;;  %v257_v15 = vlaneseq }
  0x15   : > { %813 = vset.pattern.permute.xlu1 %v926_v0  ;;  %812 = vset.pattern.permute.xlu0 %v927_v1  ;;  %s621_s12 = scalar_lea.sflag [#allocation3], %s187_s4 }
  0x16   : > { %814 = vset.pattern.permute.xlu2 %v928_v2  ;;  %s749_s24 = sshll.u32 %s192_s23, 4  ;;  %s743_s28 = sshll.u32 %s192_s23, 2  ;;  %v258_v20 = vand.u32 127, %v257_v15 }
  0x17   : > { %s198_s27 = scalar_lea.vmem %s1068_s0, %s749_s24  ;;  %s206_s3 = scalar_lea.vmem %s1069_s1, %s743_s28 }
  0x18   : > { %v208_v3 = vld [vmem:[%s198_s27] sm:$0xff]  ;;  %v209_v4 = vld [vmem:[%s198_s27 + $0x8] sm:$0xff]  ;;  %s860_s23 = sshra.s32 %s638_s20, 4  ;;  %s866_s27 = scalar_lea.hbm %s1070_s2, 32  ;;  %s861_s23 = int_to_ptr.hbm [resolvable:$true] %s860_s23 }
  0x19   : > { %227 = vperm.xlu1 %813, %v208_v3   ;;  %213 = vperm.xlu0 %812, %v208_v3   ;;  %v210_v5 = vld [vmem:[%s206_s3] sm:$0x7]  ;;  %s862_s24 = scalar_lea.hbm %s861_s23, 16  ;;  %p867_p1 = scmp.lt.s32.totalorder %s861_s23, %s1070_s2 }
  0x1a   : > { %242 = vperm.xlu2 %814, %v208_v3   ;;  %v249_v6 = vperm.slane %v210_v5, 2  ;;  %v234_v8 = vperm.slane %v210_v5, 1  ;;  %v221_v9 = vperm.slane %v210_v5, 0  ;;  %p863_p12 = scmp.ne.s32.totalorder %s861_s23, %s862_s24  ;;  %p868_p2 = scmp.lt.s32.totalorder %s866_s27, %s862_s24 }
  0x1c   : > { %p864_p13 = pnand %p863_p12, %p986_p4  ;;  %p869_p3 = por %p868_p2, %p867_p1 }
  0x1e   : > { %p865_p0 = pneg %p864_p13 }
  0x20   : > { %p870_p5 = pnand %p869_p3, %p865_p0 }
  0x21   : > { %231 = vperm.xlu1 %813, %v209_v4   ;;  %218 = vperm.xlu0 %812, %v209_v4  }
  0x22   : > { %246 = vperm.xlu2 %814, %v209_v4  }
  0x29   : > { %815 = vset.pattern.permute.xlu0 %v928_v2 }
  0x74   : > { %v243_v7 = vpop.permute.xlu2 %242 }
  0x75   : > { %v250_v10 = vsub.f32 %v243_v7, %v249_v6 }
  0x77   : > { %v252_v16 = vmul.f32 %v250_v10, %v250_v10 }
  0x7c   : > { %v247_v21 = vpop.permute.xlu2 %246 }
  0x7d   : > { %v251_v25 = vsub.f32 %v247_v21, %v249_v6 }
  0x7f   : > { %v253_v32 = vmul.f32 %v251_v25, %v251_v25 }
  0x8b   : > { %v228_v11 = vpop.permute.xlu1 %227  ;;  %v214_v12 = vpop.permute.xlu0 %213 }
  0x8c   : > { %v235_v13 = vsub.f32 %v228_v11, %v234_v8  ;;  %v222_v14 = vsub.f32 %v214_v12, %v221_v9 }
  0x8e   : > { %v237_v17 = vmul.f32 %v235_v13, %v235_v13  ;;  %v224_v18 = vmul.f32 %v222_v14, %v222_v14 }
  0x90   : > { %v239_v19 = vadd.f32 %v237_v17, %v224_v18 }
  0x92   : > { %v254_v22 = vadd.f32 %v252_v16, %v239_v19 }
  0x93   : > { %v232_v23 = vpop.permute.xlu1 %231  ;;  %v219_v24 = vpop.permute.xlu0 %218 }
  0x94   : > { %vm261_vm0 = vcmp.le.f32.partialorder %v254_v22, 0.81  ;;  %v236_v26 = vsub.f32 %v232_v23, %v234_v8  ;;  %v223_v27 = vsub.f32 %v219_v24, %v221_v9 }
  0x95   : > { %v263_v28 = vsel %vm261_vm0, %v258_v20, 64 }
  0x96   : > { %v238_v29 = vmul.f32 %v236_v26, %v236_v26  ;;  %v225_v30 = vmul.f32 %v223_v27, %v223_v27  ;;  %vm816_vm1 = vcmp.gt.s32.totalorder %v263_v28, 64 }
  0x97   : > { %v274_v31 = vsel %vm816_vm1, 64, %v263_v28 }
  0x98   : > { %v240_v33 = vadd.f32 %v238_v29, %v225_v30  ;;  %v276_v34 = vshra.s32 %v274_v31, 16  ;;  %v275_v41 = vand.u32 65535, %v274_v31 }
  0x9a   : > { %v255_v35 = vadd.f32 %v253_v32, %v240_v33  ;;  %v278_v36 = vcvt.s32.f32 %v276_v34  ;;  %v277_v43 = vcvt.s32.f32 %v275_v41 }
  0x9c   : > { %vm262_vm2 = vcmp.le.f32.partialorder %v255_v35, 0.81  ;;  %279 = vmin.xlane.f32.xlu0 %v278_v36 }
  0x9d   : > { %v264_v37 = vsel %vm262_vm2, %v258_v20, 64  ;;  %vm585_vm2 = vcmask 7168  }
  0x9e   : > { %vm817_vm3 = vcmp.gt.s32.totalorder %v264_v37, 64 }
  0x9f   : > { %v290_v38 = vsel %vm817_vm3, 64, %v264_v37  ;;  %vm588_vm3 = vcmask 15360  }
  0xa0   : > { %v292_v39 = vshra.s32 %v290_v38, 16  ;;  %v291_v45 = vand.u32 65535, %v290_v38 }
  0xa2   : > { %v294_v40 = vcvt.s32.f32 %v292_v39  ;;  %v293_v47 = vcvt.s32.f32 %v291_v45 }
  0xa4   : > { %295 = vmin.xlane.f32.xlu1 %v294_v40 }
 0x10f   : > { %v280_v42 = vpop.xlane.xlu0 %279 }
 0x110   : > { %vm281_vm4 = vcmp.eq.f32.partialorder %v278_v36, %v280_v42  ;;  %v286_v49 = vcvt.f32.s32 %v280_v42 }
 0x111   : > { %v282_v44 = vsel %vm281_vm4, %v277_v43, inf }
 0x112   : > { %283 = vmin.xlane.f32.xlu2 %v282_v44  ;;  %v287_v51 = vshll.u32 %v286_v49, 16 }
 0x117   : > { %v296_v46 = vpop.xlane.xlu1 %295 }
 0x118   : > { %vm297_vm5 = vcmp.eq.f32.partialorder %v294_v40, %v296_v46  ;;  %v302_v54 = vcvt.f32.s32 %v296_v46 }
 0x119   : > { %v298_v48 = vsel %vm297_vm5, %v293_v47, inf }
 0x11a   : > { %299 = vmin.xlane.f32.xlu2 %v298_v48  ;;  %v303_v58 = vshll.u32 %v302_v54, 16 }
 0x185   : > { %v284_v50 = vpop.xlane.xlu2 %283 }
 0x186   : > { %v285_v52 = vcvt.f32.s32 %v284_v50 }
 0x188   : > { %v1009_v53 = vadd.s32 %v287_v51, %v285_v52 }
 0x18a   : > { %vm306_vm6 = vcmp.eq.s32.totalorder %v263_v28, %v1009_v53 }
 0x18b   : > { %v310_v55 = vsel %vm306_vm6, 64, %v263_v28 }
 0x18c   : > { %vm819_vm7 = vcmp.gt.s32.totalorder %v310_v55, 64 }
 0x18d   : > { %v300_v56 = vpop.xlane.xlu2 %299  ;;  %v314_v57 = vsel %vm819_vm7, 64, %v310_v55 }
 0x18e   : > { %v301_v59 = vcvt.f32.s32 %v300_v56  ;;  %v316_v60 = vshra.s32 %v314_v57, 16  ;;  %v315_v3 = vand.u32 65535, %v314_v57 }
 0x190   : > { %v1012_v61 = vadd.s32 %v303_v58, %v301_v59  ;;  %v318_v62 = vcvt.s32.f32 %v316_v60  ;;  %v317_v5 = vcvt.s32.f32 %v315_v3 }
 0x192   : > { %319 = vmin.xlane.f32.xlu0 %v318_v62  ;;  %vm308_vm8 = vcmp.eq.s32.totalorder %v264_v37, %v1012_v61 }
 0x193   : > { %v312_v63 = vsel %vm308_vm8, 64, %v264_v37 }
 0x194   : > { %vm821_vm9 = vcmp.gt.s32.totalorder %v312_v63, 64 }
 0x195   : > { %v330_v0 = vsel %vm821_vm9, 64, %v312_v63 }
 0x196   : > { %v332_v1 = vshra.s32 %v330_v0, 16  ;;  %v331_v7 = vand.u32 65535, %v330_v0 }
 0x198   : > { %v334_v2 = vcvt.s32.f32 %v332_v1  ;;  %v333_v9 = vcvt.s32.f32 %v331_v7 }
 0x19a   : > { %335 = vmin.xlane.f32.xlu1 %v334_v2 }
 0x205   : > { %v320_v4 = vpop.xlane.xlu0 %319 }
 0x206   : > { %vm321_vm10 = vcmp.eq.f32.partialorder %v318_v62, %v320_v4  ;;  %v326_v11 = vcvt.f32.s32 %v320_v4 }
 0x207   : > { %v322_v6 = vsel %vm321_vm10, %v317_v5, inf  ;;  %vm591_vm10 = vcmask 23552  }
 0x208   : > { %323 = vmin.xlane.f32.xlu2 %v322_v6  ;;  %v327_v13 = vshll.u32 %v326_v11, 16 }
 0x20d   : > { %v336_v8 = vpop.xlane.xlu1 %335 }
 0x20e   : > { %vm337_vm11 = vcmp.eq.f32.partialorder %v334_v2, %v336_v8  ;;  %v342_v16 = vcvt.f32.s32 %v336_v8 }
 0x20f   : > { %v338_v10 = vsel %vm337_vm11, %v333_v9, inf }
 0x210   : > { %339 = vmin.xlane.f32.xlu0 %v338_v10  ;;  %v343_v20 = vshll.u32 %v342_v16, 16 }
 0x27b   : > { %v324_v12 = vpop.xlane.xlu2 %323 }
 0x27c   : > { %v325_v14 = vcvt.f32.s32 %v324_v12 }
 0x27e   : > { %v328_v15 = vadd.s32 %v327_v13, %v325_v14 }
 0x280   : > { %vm346_vm12 = vcmp.eq.s32.totalorder %v310_v55, %v328_v15  ;;  %v586_v42 = vsel %vm585_vm2, %v1009_v53, %v328_v15 }
 0x281   : > { %v350_v17 = vsel %vm346_vm12, 64, %v310_v55 }
 0x282   : > { %vm823_vm13 = vcmp.gt.s32.totalorder %v350_v17, 64 }
 0x283   : > { %v340_v18 = vpop.xlane.xlu0 %339  ;;  %v354_v19 = vsel %vm823_vm13, 64, %v350_v17 }
 0x284   : > { %v341_v21 = vcvt.f32.s32 %v340_v18  ;;  %v356_v22 = vshra.s32 %v354_v19, 16  ;;  %v355_v29 = vand.u32 65535, %v354_v19 }
 0x286   : > { %v344_v23 = vadd.s32 %v343_v20, %v341_v21  ;;  %v358_v24 = vcvt.s32.f32 %v356_v22  ;;  %v357_v31 = vcvt.s32.f32 %v355_v29 }
 0x288   : > { %vm348_vm14 = vcmp.eq.s32.totalorder %v312_v63, %v344_v23  ;;  %359 = vmin.xlane.f32.xlu1 %v358_v24  ;;  %v587_v54 = vsel %vm585_vm2, %v1012_v61, %v344_v23 }
 0x289   : > { %v352_v25 = vsel %vm348_vm14, 64, %v312_v63 }
 0x28a   : > { %vm825_vm15 = vcmp.gt.s32.totalorder %v352_v25, 64 }
 0x28b   : > { %v370_v26 = vsel %vm825_vm15, 64, %v352_v25 }
 0x28c   : > { %v372_v27 = vshra.s32 %v370_v26, 16  ;;  %v371_v33 = vand.u32 65535, %v370_v26 }
 0x28e   : > { %v374_v28 = vcvt.s32.f32 %v372_v27  ;;  %v373_v35 = vcvt.s32.f32 %v371_v33 }
 0x290   : > { %375 = vmin.xlane.f32.xlu2 %v374_v28 }
 0x2fb   : > { %v360_v30 = vpop.xlane.xlu1 %359 }
 0x2fc   : > { %vm361_vm0 = vcmp.eq.f32.partialorder %v358_v24, %v360_v30  ;;  %v366_v37 = vcvt.f32.s32 %v360_v30 }
 0x2fd   : > { %v362_v32 = vsel %vm361_vm0, %v357_v31, inf }
 0x2fe   : > { %363 = vmin.xlane.f32.xlu0 %v362_v32  ;;  %v367_v39 = vshll.u32 %v366_v37, 16 }
 0x303   : > { %v376_v34 = vpop.xlane.xlu2 %375 }
 0x304   : > { %vm377_vm1 = vcmp.eq.f32.partialorder %v374_v28, %v376_v34  ;;  %v382_v43 = vcvt.f32.s32 %v376_v34 }
 0x305   : > { %v378_v36 = vsel %vm377_vm1, %v373_v35, inf  ;;  %vm594_vm1 = vcmask 31744  }
 0x306   : > { %379 = vmin.xlane.f32.xlu1 %v378_v36  ;;  %v383_v48 = vshll.u32 %v382_v43, 16 }
 0x371   : > { %v364_v38 = vpop.xlane.xlu0 %363 }
 0x372   : > { %v365_v40 = vcvt.f32.s32 %v364_v38 }
 0x374   : > { %v368_v41 = vadd.s32 %v367_v39, %v365_v40 }
 0x376   : > { %vm386_vm4 = vcmp.eq.s32.totalorder %v350_v17, %v368_v41  ;;  %v589_v44 = vsel %vm588_vm3, %v586_v42, %v368_v41 }
 0x377   : > { %v390_v45 = vsel %vm386_vm4, 64, %v350_v17 }
 0x378   : > { %vm827_vm5 = vcmp.gt.s32.totalorder %v390_v45, 64 }
 0x379   : > { %v380_v46 = vpop.xlane.xlu1 %379  ;;  %v394_v47 = vsel %vm827_vm5, 64, %v390_v45 }
 0x37a   : > { %v381_v49 = vcvt.f32.s32 %v380_v46  ;;  %v396_v50 = vshra.s32 %v394_v47, 16  ;;  %v395_v60 = vand.u32 65535, %v394_v47 }
 0x37c   : > { %v384_v51 = vadd.s32 %v383_v48, %v381_v49  ;;  %v398_v52 = vcvt.s32.f32 %v396_v50  ;;  %v397_v63 = vcvt.s32.f32 %v395_v60 }
 0x37e   : > { %vm388_vm6 = vcmp.eq.s32.totalorder %v352_v25, %v384_v51  ;;  %v590_v55 = vsel %vm588_vm3, %v587_v54, %v384_v51  ;;  %399 = vmin.xlane.f32.xlu2 %v398_v52 }
 0x37f   : > { %v392_v56 = vsel %vm388_vm6, 64, %v352_v25 }
 0x380   : > { %vm829_vm7 = vcmp.gt.s32.totalorder %v392_v56, 64 }
 0x381   : > { %v410_v57 = vsel %vm829_vm7, 64, %v392_v56 }
 0x382   : > { %v412_v58 = vshra.s32 %v410_v57, 16  ;;  %v411_v1 = vand.u32 65535, %v410_v57 }
 0x384   : > { %v414_v59 = vcvt.s32.f32 %v412_v58  ;;  %v413_v3 = vcvt.s32.f32 %v411_v1 }
 0x386   : > { %415 = vmin.xlane.f32.xlu0 %v414_v59 }
 0x3f1   : > { %v400_v62 = vpop.xlane.xlu2 %399 }
 0x3f2   : > { %vm401_vm8 = vcmp.eq.f32.partialorder %v398_v52, %v400_v62  ;;  %v406_v5 = vcvt.f32.s32 %v400_v62 }
 0x3f3   : > { %v402_v0 = vsel %vm401_vm8, %v397_v63, inf  ;;  %vm597_vm8 = vcmask 39936  }
 0x3f4   : > { %403 = vmin.xlane.f32.xlu1 %v402_v0  ;;  %v407_v7 = vshll.u32 %v406_v5, 16 }
 0x3f9   : > { %v416_v2 = vpop.xlane.xlu0 %415 }
 0x3fa   : > { %vm417_vm9 = vcmp.eq.f32.partialorder %v414_v59, %v416_v2  ;;  %v422_v10 = vcvt.f32.s32 %v416_v2 }
 0x3fb   : > { %v418_v4 = vsel %vm417_vm9, %v413_v3, inf }
 0x3fc   : > { %419 = vmin.xlane.f32.xlu2 %v418_v4  ;;  %v423_v15 = vshll.u32 %v422_v10, 16 }
 0x467   : > { %v404_v6 = vpop.xlane.xlu1 %403 }
 0x468   : > { %v405_v8 = vcvt.f32.s32 %v404_v6 }
 0x46a   : > { %v408_v9 = vadd.s32 %v407_v7, %v405_v8 }
 0x46c   : > { %vm426_vm11 = vcmp.eq.s32.totalorder %v390_v45, %v408_v9  ;;  %v592_v11 = vsel %vm591_vm10, %v589_v44, %v408_v9 }
 0x46d   : > { %v430_v12 = vsel %vm426_vm11, 64, %v390_v45 }
 0x46e   : > { %vm831_vm12 = vcmp.gt.s32.totalorder %v430_v12, 64 }
 0x46f   : > { %v420_v13 = vpop.xlane.xlu2 %419  ;;  %v434_v14 = vsel %vm831_vm12, 64, %v430_v12 }
 0x470   : > { %v421_v16 = vcvt.f32.s32 %v420_v13  ;;  %v436_v17 = vshra.s32 %v434_v14, 16  ;;  %v435_v25 = vand.u32 65535, %v434_v14 }
 0x472   : > { %v424_v18 = vadd.s32 %v423_v15, %v421_v16  ;;  %v438_v19 = vcvt.s32.f32 %v436_v17  ;;  %v437_v27 = vcvt.s32.f32 %v435_v25 }
 0x474   : > { %vm428_vm13 = vcmp.eq.s32.totalorder %v392_v56, %v424_v18  ;;  %v593_v20 = vsel %vm591_vm10, %v590_v55, %v424_v18  ;;  %439 = vmin.xlane.f32.xlu0 %v438_v19 }
 0x475   : > { %v432_v21 = vsel %vm428_vm13, 64, %v392_v56 }
 0x476   : > { %vm833_vm14 = vcmp.gt.s32.totalorder %v432_v21, 64 }
 0x477   : > { %v450_v22 = vsel %vm833_vm14, 64, %v432_v21 }
 0x478   : > { %v452_v23 = vshra.s32 %v450_v22, 16  ;;  %v451_v29 = vand.u32 65535, %v450_v22 }
 0x47a   : > { %v454_v24 = vcvt.s32.f32 %v452_v23  ;;  %v453_v31 = vcvt.s32.f32 %v451_v29 }
 0x47c   : > { %455 = vmin.xlane.f32.xlu1 %v454_v24 }
 0x4e7   : > { %v440_v26 = vpop.xlane.xlu0 %439 }
 0x4e8   : > { %vm441_vm15 = vcmp.eq.f32.partialorder %v438_v19, %v440_v26  ;;  %v446_v33 = vcvt.f32.s32 %v440_v26 }
 0x4e9   : > { %v442_v28 = vsel %vm441_vm15, %v437_v27, inf  ;;  %vm600_vm15 = vcmask 48128  }
 0x4ea   : > { %443 = vmin.xlane.f32.xlu2 %v442_v28  ;;  %v447_v35 = vshll.u32 %v446_v33, 16 }
 0x4ef   : > { %v456_v30 = vpop.xlane.xlu1 %455 }
 0x4f0   : > { %vm457_vm0 = vcmp.eq.f32.partialorder %v454_v24, %v456_v30  ;;  %v462_v38 = vcvt.f32.s32 %v456_v30 }
 0x4f1   : > { %v458_v32 = vsel %vm457_vm0, %v453_v31, inf }
 0x4f2   : > { %459 = vmin.xlane.f32.xlu0 %v458_v32  ;;  %v463_v43 = vshll.u32 %v462_v38, 16 }
 0x55d   : > { %v444_v34 = vpop.xlane.xlu2 %443 }
 0x55e   : > { %v445_v36 = vcvt.f32.s32 %v444_v34 }
 0x560   : > { %v448_v37 = vadd.s32 %v447_v35, %v445_v36 }
 0x562   : > { %vm466_vm2 = vcmp.eq.s32.totalorder %v430_v12, %v448_v37  ;;  %v595_v39 = vsel %vm594_vm1, %v592_v11, %v448_v37 }
 0x563   : > { %v470_v40 = vsel %vm466_vm2, 64, %v430_v12 }
 0x564   : > { %vm835_vm3 = vcmp.gt.s32.totalorder %v470_v40, 64 }
 0x565   : > { %v460_v41 = vpop.xlane.xlu0 %459  ;;  %v474_v42 = vsel %vm835_vm3, 64, %v470_v40 }
 0x566   : > { %v461_v44 = vcvt.f32.s32 %v460_v41  ;;  %v476_v45 = vshra.s32 %v474_v42, 16  ;;  %v475_v54 = vand.u32 65535, %v474_v42 }
 0x568   : > { %v464_v46 = vadd.s32 %v463_v43, %v461_v44  ;;  %v478_v47 = vcvt.s32.f32 %v476_v45  ;;  %v477_v56 = vcvt.s32.f32 %v475_v54 }
 0x56a   : > { %vm468_vm4 = vcmp.eq.s32.totalorder %v432_v21, %v464_v46  ;;  %v596_v48 = vsel %vm594_vm1, %v593_v20, %v464_v46  ;;  %479 = vmin.xlane.f32.xlu1 %v478_v47 }
 0x56b   : > { %v472_v49 = vsel %vm468_vm4, 64, %v432_v21 }
 0x56c   : > { %vm837_vm5 = vcmp.gt.s32.totalorder %v472_v49, 64 }
 0x56d   : > { %v490_v50 = vsel %vm837_vm5, 64, %v472_v49 }
 0x56e   : > { %v492_v51 = vshra.s32 %v490_v50, 16  ;;  %v491_v58 = vand.u32 65535, %v490_v50 }
 0x570   : > { %v494_v52 = vcvt.s32.f32 %v492_v51  ;;  %v493_v60 = vcvt.s32.f32 %v491_v58 }
 0x572   : > { %495 = vmin.xlane.f32.xlu2 %v494_v52 }
 0x5dd   : > { %v480_v55 = vpop.xlane.xlu1 %479 }
 0x5de   : > { %vm481_vm6 = vcmp.eq.f32.partialorder %v478_v47, %v480_v55  ;;  %v486_v63 = vcvt.f32.s32 %v480_v55 }
 0x5df   : > { %v482_v57 = vsel %vm481_vm6, %v477_v56, inf  ;;  %vm603_vm6 = vcmask 56320  }
 0x5e0   : > { %483 = vmin.xlane.f32.xlu0 %v482_v57  ;;  %v487_v1 = vshll.u32 %v486_v63, 16 }
 0x5e5   : > { %v496_v59 = vpop.xlane.xlu2 %495 }
 0x5e6   : > { %vm497_vm7 = vcmp.eq.f32.partialorder %v494_v52, %v496_v59  ;;  %v502_v4 = vcvt.f32.s32 %v496_v59 }
 0x5e7   : > { %v498_v62 = vsel %vm497_vm7, %v493_v60, inf  ;;  %vm615_vm7 = vcmask 64512  }
 0x5e8   : > { %499 = vmin.xlane.f32.xlu1 %v498_v62  ;;  %v503_v9 = vshll.u32 %v502_v4, 16 }
 0x653   : > { %v484_v0 = vpop.xlane.xlu0 %483 }
 0x654   : > { %v485_v2 = vcvt.f32.s32 %v484_v0 }
 0x656   : > { %v488_v3 = vadd.s32 %v487_v1, %v485_v2 }
 0x658   : > { %vm506_vm9 = vcmp.eq.s32.totalorder %v470_v40, %v488_v3  ;;  %v598_v5 = vsel %vm597_vm8, %v595_v39, %v488_v3 }
 0x659   : > { %v510_v6 = vsel %vm506_vm9, 64, %v470_v40 }
 0x65a   : > { %vm839_vm10 = vcmp.gt.s32.totalorder %v510_v6, 64 }
 0x65b   : > { %v500_v7 = vpop.xlane.xlu1 %499  ;;  %v514_v8 = vsel %vm839_vm10, 64, %v510_v6 }
 0x65c   : > { %v501_v10 = vcvt.f32.s32 %v500_v7  ;;  %v516_v11 = vshra.s32 %v514_v8, 16  ;;  %v515_v19 = vand.u32 65535, %v514_v8 }
 0x65e   : > { %v504_v12 = vadd.s32 %v503_v9, %v501_v10  ;;  %v518_v13 = vcvt.s32.f32 %v516_v11  ;;  %v517_v21 = vcvt.s32.f32 %v515_v19 }
 0x660   : > { %vm508_vm11 = vcmp.eq.s32.totalorder %v472_v49, %v504_v12  ;;  %v599_v14 = vsel %vm597_vm8, %v596_v48, %v504_v12  ;;  %519 = vmin.xlane.f32.xlu2 %v518_v13 }
 0x661   : > { %v512_v15 = vsel %vm508_vm11, 64, %v472_v49 }
 0x662   : > { %vm841_vm12 = vcmp.gt.s32.totalorder %v512_v15, 64 }
 0x663   : > { %v530_v16 = vsel %vm841_vm12, 64, %v512_v15 }
 0x664   : > { %v532_v17 = vshra.s32 %v530_v16, 16  ;;  %v531_v23 = vand.u32 65535, %v530_v16 }
 0x666   : > { %v534_v18 = vcvt.s32.f32 %v532_v17  ;;  %v533_v25 = vcvt.s32.f32 %v531_v23 }
 0x668   : > { %535 = vmin.xlane.f32.xlu0 %v534_v18 }
 0x6d3   : > { %v520_v20 = vpop.xlane.xlu2 %519 }
 0x6d4   : > { %vm521_vm13 = vcmp.eq.f32.partialorder %v518_v13, %v520_v20  ;;  %v526_v27 = vcvt.f32.s32 %v520_v20 }
 0x6d5   : > { %v522_v22 = vsel %vm521_vm13, %v517_v21, inf }
 0x6d6   : > { %523 = vmin.xlane.f32.xlu1 %v522_v22  ;;  %v527_v29 = vshll.u32 %v526_v27, 16 }
 0x6db   : > { %v536_v24 = vpop.xlane.xlu0 %535 }
 0x6dc   : > { %vm537_vm14 = vcmp.eq.f32.partialorder %v534_v18, %v536_v24  ;;  %v542_v32 = vcvt.f32.s32 %v536_v24 }
 0x6dd   : > { %v538_v26 = vsel %vm537_vm14, %v533_v25, inf }
 0x6de   : > { %539 = vmin.xlane.f32.xlu2 %v538_v26  ;;  %v543_v37 = vshll.u32 %v542_v32, 16 }
 0x749   : > { %v524_v28 = vpop.xlane.xlu1 %523 }
 0x74a   : > { %v525_v30 = vcvt.f32.s32 %v524_v28 }
 0x74c   : > { %v528_v31 = vadd.s32 %v527_v29, %v525_v30 }
 0x74e   : > { %v601_v33 = vsel %vm600_vm15, %v598_v5, %v528_v31  ;;  %vm546_vm0 = vcmp.eq.s32.totalorder %v510_v6, %v528_v31 }
 0x74f   : > { %v550_v34 = vsel %vm546_vm0, 64, %v510_v6 }
 0x750   : > { %vm843_vm1 = vcmp.gt.s32.totalorder %v550_v34, 64 }
 0x751   : > { %v540_v35 = vpop.xlane.xlu2 %539  ;;  %v554_v36 = vsel %vm843_vm1, 64, %v550_v34 }
 0x752   : > { %v541_v38 = vcvt.f32.s32 %v540_v35  ;;  %v556_v39 = vshra.s32 %v554_v36, 16  ;;  %v555_v47 = vand.u32 65535, %v554_v36 }
 0x754   : > { %v544_v40 = vadd.s32 %v543_v37, %v541_v38  ;;  %v558_v41 = vcvt.s32.f32 %v556_v39  ;;  %v557_v49 = vcvt.s32.f32 %v555_v47 }
 0x756   : > { %v602_v42 = vsel %vm600_vm15, %v599_v14, %v544_v40  ;;  %559 = vmin.xlane.f32.xlu0 %v558_v41  ;;  %vm548_vm2 = vcmp.eq.s32.totalorder %v512_v15, %v544_v40 }
 0x757   : > { %v552_v43 = vsel %vm548_vm2, 64, %v512_v15 }
 0x758   : > { %vm845_vm3 = vcmp.gt.s32.totalorder %v552_v43, 64 }
 0x759   : > { %v570_v44 = vsel %vm845_vm3, 64, %v552_v43 }
 0x75a   : > { %v572_v45 = vshra.s32 %v570_v44, 16  ;;  %v571_v51 = vand.u32 65535, %v570_v44 }
 0x75c   : > { %v574_v46 = vcvt.s32.f32 %v572_v45  ;;  %v573_v54 = vcvt.s32.f32 %v571_v51 }
 0x75e   : > { %575 = vmin.xlane.f32.xlu1 %v574_v46 }
 0x7c9   : > { %v560_v48 = vpop.xlane.xlu0 %559 }
 0x7ca   : > { %vm561_vm4 = vcmp.eq.f32.partialorder %v558_v41, %v560_v48  ;;  %v566_v56 = vcvt.f32.s32 %v560_v48 }
 0x7cb   : > { %v562_v50 = vsel %vm561_vm4, %v557_v49, inf }
 0x7cc   : > { %563 = vmin.xlane.f32.xlu2 %v562_v50  ;;  %v567_v58 = vshll.u32 %v566_v56, 16 }
 0x7d1   : > { %v576_v52 = vpop.xlane.xlu1 %575 }
 0x7d2   : > { %vm577_vm5 = vcmp.eq.f32.partialorder %v574_v46, %v576_v52  ;;  %v582_v62 = vcvt.f32.s32 %v576_v52 }
 0x7d3   : > { %v578_v55 = vsel %vm577_vm5, %v573_v54, inf }
 0x7d4   : > { %579 = vmin.xlane.f32.xlu0 %v578_v55  ;;  %v583_v3 = vshll.u32 %v582_v62, 16 }
 0x83f   : > { %v564_v57 = vpop.xlane.xlu2 %563 }
 0x840   : > { %v565_v59 = vcvt.f32.s32 %v564_v57 }
 0x842   : > { %v568_v60 = vadd.s32 %v567_v58, %v565_v59 }
 0x844   : > { %v604_v63 = vsel %vm603_vm6, %v601_v33, %v568_v60 }
 0x845   : > { %vm606_vm8 = vcmp.eq.s32.totalorder %v604_v63, 64 }
 0x846   : > { %v613_v0 = vsel %vm606_vm8, %v1009_v53, %v604_v63 }
 0x847   : > { %v616_v1 = vsel %vm615_vm7, %v613_v0, 64  ;;  %v580_v2 = vpop.xlane.xlu0 %579 }
 0x848   : > { %618 = vst [vmem:[%s189_s16] sm:$0xff] %v616_v1  ;;  %v581_v4 = vcvt.f32.s32 %v580_v2 }
 0x84a   : > { %v584_v5 = vadd.s32 %v583_v3, %v581_v4 }
 0x84c   : > { %v605_v6 = vsel %vm603_vm6, %v602_v42, %v584_v5 }
 0x84d   : > { %vm607_vm9 = vcmp.eq.s32.totalorder %v605_v6, 64 }
 0x84e   : > { %v614_v53 = vsel %vm607_vm9, %v1012_v61, %v605_v6 }
 0x84f   : > { %v617_v7 = vsel %vm615_vm7, %v614_v53, 64 }
 0x850   : > { %619 = vst [vmem:[%s189_s16 + $0x8] sm:$0xff] %v617_v7 }
 0x851   : > { %873 = shalt.err (!%p870_p5)
}
 0x852   : > { %s929_s30 = smov 128   ;;  %s930_s3 = smov 8  }
 0x853   : > { %751 = dma.vmem_to_hbm [thread:$0]  (%p986_p4), %s636_s18, 256, %s638_s20, %s621_s12, %s929_s30, %s929_s30, %s930_s3  }
 0x854 PF: > { %p757_p6 = scmp.ge.s32.totalorder %s924_s14, 2  ;;  %s652_s4 = sand.u32 1, %s904_s9  }
 0x855   : > { %s653_s5 = scalar_lea.sflag [#allocation3], %s652_s4 }
 0x856   : > { %p754_p7 = pnand %p757_p6, %p993_p8 }
 0x858   : > { %p755_p9 = pneg %p754_p7 }
 0x85a   : > { %899 = dma.done.wait (%p755_p9), %s653_s5, 256  }
 0x85b   : > { %901 = vsyncadd (%p755_p9), %s653_s5, 4294967040  ;;  %s15_s14 = sadd.s32 1, %s924_s14   ;;  %s1073_s9 = smov %s908_s10 }
 0x85c   : > { %p12_p10 = scmp.ge.s32.totalorder %s15_s14, 4   ;;  %s1074_s10 = smov %s912_s11 }
 0x85d   : > { %s1075_s11 = smov %s999_s22  ;;  %s1076_s12 = smov %s920_s13 }
 0x85e   : > { %s1077_s13 = smov %s1079_s17  ;;  %14 = sbr.rel (!%p12_p10) target bundleno = 4 (0x4), region = 70 }
 0x863   :  { %659 = vsyncpa [#allocation3], 1 }
 0x864   :  { %661 = vsyncpa [#allocation3 + $0x1], 1 }

</bundles_post_ra>
